<compile_context>
chip_gen: v7x
topology: tpu7x:2x2x1
jax: 0.10.0
libtpu: 0.0.40
codegen_flags: <defaults>
</compile_context>

<pallas_src>
import functools
import math

import jax
import jax.numpy as jnp
from jax.experimental import pallas as pl
from jax.experimental.pallas import tpu as pltpu


def _round_up(x, m):
    return ((x + m - 1) // m) * m


def _vmem_limit(nbytes):
    # 2x headroom over the static estimate, clamped to [32 MiB, 64 MiB] so the request is
    # legal on v7x (64 MiB physical) and above the scoped defaults on v5e/v6e.
    return int(min(64 * 1024 * 1024, max(32 * 1024 * 1024, 2 * int(nbytes))))


# --------------------------------------------------------------------------------------
# Kernel 1: projection.  h = x @ W (bf16 MXU, f32 accum);  f12 = h @ [a1 | a2 | 0...0]
# (lane-dense 128-wide RHS so the f12 store is an unmasked full-lane store).
# --------------------------------------------------------------------------------------
def _project_kernel(x_ref, w_ref, a12_ref, hbf_ref, f12_ref):
    x = x_ref[...].astype(jnp.bfloat16)                      # (TM, in)
    w = w_ref[...].astype(jnp.bfloat16)                      # (in, Fp)
    h = jnp.dot(x, w, preferred_element_type=jnp.float32)    # (TM, Fp) f32 accum
    f12_ref[...] = jnp.dot(h, a12_ref[...],
                           preferred_element_type=jnp.float32)   # (TM, 128)
    hbf_ref[...] = h.astype(jnp.bfloat16)                    # only bf16 h goes to HBM


# --------------------------------------------------------------------------------------
# Kernel 2: streaming masked softmax + propagation.
# Grid = (row tiles ["parallel"], col tiles ["arbitrary", last]).  Accumulates the
# un-normalised context (acc) and the denominator (l) across column tiles; finalizes
# (normalise, isolated-node blend, keep_ratio mix, optional ELU) on the last col step.
# --------------------------------------------------------------------------------------
def _attention_kernel(adj_ref, hk_ref, hq_ref, f1_ref, m_ref, f2_ref, o_ref,
                      acc_ref, l_ref, *, alpha, keep_ratio, concat):
    j = pl.program_id(1)

    @pl.when(j == 0)
    def _():
        acc_ref[...] = jnp.zeros_like(acc_ref)
        l_ref[...] = jnp.zeros_like(l_ref)

    adj = adj_ref[...]                          # (TM, TK) int8 0/1 pattern
    f1 = f1_ref[...]                            # (TM, 1)  f32
    f2 = f2_ref[...]                            # (1, TK)  f32
    m = m_ref[...]                              # (TM, 1)  f32 per-row max upper bound

    # logits for this tile: LeakyReLU(f1 + f2)
    e = f1 + f2                                                   # VPU broadcast add
    e = jnp.where(e > 0, e, jnp.float32(alpha) * e)               # LeakyReLU(alpha)
    # exp against the per-row upper bound (e - m <= 0 for real columns); mask after exp.
    p = jnp.where(adj > 0, jnp.exp(e - m), jnp.float32(0.0))      # (TM, TK)

    l_ref[...] += jnp.sum(p, axis=1, keepdims=True)               # denominator
    acc_ref[...] += jnp.dot(p.astype(jnp.bfloat16), hk_ref[...],
                            preferred_element_type=jnp.float32)   # (TM, Fp) f32 accum

    @pl.when(j == pl.num_programs(1) - 1)
    def _():
        denom = l_ref[...]                                        # (TM, 1)
        h_blk = hq_ref[...].astype(jnp.float32)                   # (TM, Fp) residual h
        # row rescale: N reciprocals (EUP) + N*F multiplies instead of N^2 divides
        h_prime = acc_ref[...] * pl.reciprocal(denom, approx=True)
        # isolated rows (no neighbors) have denom == 0 -> keep their own features
        # (the inf/NaN in the not-taken branch is discarded by the select; do not
        #  replace this select with arithmetic masking).
        h_prime = jnp.where(denom > 0, h_prime, h_blk)
        kr = jnp.float32(keep_ratio)
        h_prime = (1.0 - kr) * h_prime + kr * h_blk
        if concat:  # ELU (alpha=1); safe exp on the negative branch only
            h_prime = jnp.where(h_prime > 0, h_prime,
                                jnp.exp(jnp.minimum(h_prime, 0.0)) - 1.0)
        o_ref[...] = h_prime.astype(o_ref.dtype)


# --------------------------------------------------------------------------------------
# Wrapper
# --------------------------------------------------------------------------------------
def multihead_propagation_layer(x, adj, W, a, *, keep_ratio, alpha=0.2, concat=True,
                                block_rows=256, block_cols=512):
    """Pallas TPU implementation of MultiheadPropagationLayer.forward (eval mode).

    x   : (N, in_features) float
    adj : (N, N) adjacency; any dtype (only the `> 0` pattern is used)
    W   : (in_features, out_features)
    a   : (2*out_features, 1)
    """
    assert block_rows % 128 == 0 and block_cols % 128 == 0
    N, in_f = x.shape
    F = W.shape[1]
    assert N >= 1 and F >= 1

    # clamp tiles to the (128-aligned) problem size, then pad N to a multiple of both
    br = max(128, min(block_rows, _round_up(N, 128)))
    bc = max(128, min(block_cols, _round_up(N, 128)))
    Np = _round_up(N, (br * bc) // math.gcd(br, bc))
    Fp = _round_up(F, 128)                      # lane-dense feature axis

    x32 = x.astype(jnp.float32)
    W32 = W.astype(jnp.float32)
    a32 = a.astype(jnp.float32)

    # zero padding is exact: padded rows/cols stay zero / masked through the pipeline
    x_p = jnp.pad(x32, ((0, Np - N), (0, 0)))
    W_p = jnp.pad(W32, ((0, 0), (0, Fp - F)))
    # adj: only the >0 pattern is needed -> stream as int8 (cast via >0, never raw astype)
    adj_p = (jnp.pad(adj, ((0, Np - N), (0, Np - N))) > 0).astype(jnp.int8)
    # lane-dense [a1 | a2 | zeros] RHS for the fused f1/f2 projection
    a12 = jnp.zeros((Fp, 128), jnp.float32)
    a12 = a12.at[:F, 0].set(a32[:F, 0])
    a12 = a12.at[:F, 1].set(a32[F:, 0])

    # ---- kernel 1: projections (row-tiled, W / a12 resident) --------------------------
    k1_vmem = (2 * (br * in_f * 4 + br * Fp * 2 + br * 128 * 4)
               + 2 * (in_f * Fp * 4 + Fp * 128 * 4)
               + 4 * br * Fp * 4)
    hbf, f12 = pl.pallas_call(
        _project_kernel,
        grid=(Np // br,),
        in_specs=[
            pl.BlockSpec((br, in_f), lambda i: (i, 0)),
            pl.BlockSpec((in_f, Fp), lambda i: (0, 0)),        # W resident (tiny)
            pl.BlockSpec((Fp, 128), lambda i: (0, 0)),         # [a1|a2|0] resident
        ],
        out_specs=[
            pl.BlockSpec((br, Fp), lambda i: (i, 0)),          # h (bf16) - only copy kept
            pl.BlockSpec((br, 128), lambda i: (i, 0)),         # [f1|f2|0] lane-dense
        ],
        out_shape=[
            jax.ShapeDtypeStruct((Np, Fp), jnp.bfloat16),
            jax.ShapeDtypeStruct((Np, 128), jnp.float32),
        ],
        compiler_params=pltpu.CompilerParams(
            dimension_semantics=("parallel",),
            vmem_limit_bytes=_vmem_limit(k1_vmem)),
        cost_estimate=pl.CostEstimate(
            flops=int(2 * Np * in_f * Fp + 2 * Np * Fp * 128),
            transcendentals=0,
            bytes_accessed=int(4 * (Np * in_f + in_f * Fp + Fp * 128)
                               + Np * Fp * 2 + Np * 128 * 4),
        ),
    )(x_p, W_p, a12)

    # O(N) wrapper-side prep: f1, f2 row, and the per-row logit-max upper bound
    # m_i = LeakyReLU(f1_i + max_j f2_j)  (monotone LeakyReLU => valid upper bound).
    f1 = f12[:, 0:1]                            # (Np, 1)
    f2_row = f12[:, 1].reshape(1, Np)           # (1, Np)
    f2_max = jnp.max(f12[:N, 1])                # scalar over real rows only
    s = f1 + f2_max
    m = jnp.where(s > 0, s, jnp.float32(alpha) * s)              # (Np, 1)

    # ---- kernel 2: streaming masked softmax + propagation -----------------------------
    k2_vmem = (2 * (br * bc * 1 + bc * Fp * 2 + br * Fp * 2 + br * 4 + br * 4 + bc * 4
                    + br * Fp * 4)
               + br * Fp * 4 + br * 4
               + 4 * br * bc * 4)
    kernel2 = functools.partial(_attention_kernel, alpha=float(alpha),
                                keep_ratio=float(keep_ratio), concat=bool(concat))
    out_p = pl.pallas_call(
        kernel2,
        grid=(Np // br, Np // bc),
        in_specs=[
            pl.BlockSpec((br, bc), lambda i, j: (i, j)),       # adj tile (int8)
            pl.BlockSpec((bc, Fp), lambda i, j: (j, 0)),       # h key tile (bf16)
            pl.BlockSpec((br, Fp), lambda i, j: (i, 0)),       # h query block (bf16)
            pl.BlockSpec((br, 1), lambda i, j: (i, 0)),        # f1 row block
            pl.BlockSpec((br, 1), lambda i, j: (i, 0)),        # per-row max upper bound
            pl.BlockSpec((1, bc), lambda i, j: (0, j)),        # f2 column tile
        ],
        out_specs=pl.BlockSpec((br, Fp), lambda i, j: (i, 0)),
        out_shape=jax.ShapeDtypeStruct((Np, Fp), jnp.float32),
        scratch_shapes=[
            pltpu.VMEM((br, Fp), jnp.float32),                 # context accumulator
            pltpu.VMEM((br, 1), jnp.float32),                  # softmax denominator
        ],
        compiler_params=pltpu.CompilerParams(
            dimension_semantics=("parallel", "arbitrary"),
            vmem_limit_bytes=_vmem_limit(k2_vmem)),
        cost_estimate=pl.CostEstimate(
            flops=int(2 * Np * Np * Fp + 8 * Np * Np),
            transcendentals=int(Np * Np + Np),
            bytes_accessed=int(Np * Np * 1 + (Np // br) * Np * Fp * 2
                               + Np * Fp * (2 + 4) + 12 * Np),
        ),
    )(adj_p, hbf, hbf, f1, m, f2_row)

    return out_p[:N, :F]


# --------------------------------------------------------------------------------------
# Pure-JAX reference mirroring the PyTorch forward (training=False)
# --------------------------------------------------------------------------------------
def _reference(x, adj, W, a, *, keep_ratio, alpha=0.2, concat=True):
    out_features = W.shape[1]
    h = x @ W
    f1 = h @ a[:out_features]
    f2 = h @ a[out_features:]
    e = f1 + f2.T
    e = jnp.where(e > 0, e, alpha * e)
    att = jnp.where(adj > 0, e, -9.0e15)
    att = jax.nn.softmax(att, axis=1)
    h_prime = att @ h
    adj_num = jnp.sum(adj, axis=1)
    adj_mask = jnp.where(adj_num > 0, 1.0, 0.0)[:, None]
    h_prime = adj_mask * h_prime + (1.0 - adj_mask) * h
    h_prime = (1.0 - keep_ratio) * h_prime + keep_ratio * h
    return jax.nn.elu(h_prime) if concat else h_prime


if __name__ == "__main__":
    # Small synthetic problem consistent with the module's forward: N nodes, in->out.
    N, in_features, out_features = 20, 16, 32
    keep_ratio, alpha = 0.3, 0.2

    key = jax.random.PRNGKey(0)
    kx, kadj, kw, ka = jax.random.split(key, 4)

    x = jax.random.normal(kx, (N, in_features), dtype=jnp.float32)
    adj = (jax.random.uniform(kadj, (N, N)) > 0.5).astype(jnp.float32)
    adj = adj.at[3, :].set(0.0)   # isolated node -> exercises the adj_mask path

    # Deterministic xavier_uniform_(gain=1.414)-style init for W and a.
    gain = 1.414
    bw = gain * math.sqrt(6.0 / (in_features + out_features))
    W = jax.random.uniform(kw, (in_features, out_features), jnp.float32,
                           minval=-bw, maxval=bw)
    ba = gain * math.sqrt(6.0 / (2 * out_features + 1))
    a = jax.random.uniform(ka, (2 * out_features, 1), jnp.float32,
                           minval=-ba, maxval=ba)

    for concat in (True, False):
        out = multihead_propagation_layer(x, adj, W, a, keep_ratio=keep_ratio,
                                          alpha=alpha, concat=concat)
        out = jax.block_until_ready(out)
        ref = _reference(x, adj, W, a, keep_ratio=keep_ratio, alpha=alpha, concat=concat)
        assert out.shape == (N, out_features)
        # bf16 MXU operands + approx reciprocal -> compare with a loose tolerance
        assert jnp.allclose(out, ref, atol=5e-2, rtol=5e-2), \
            f"mismatch vs reference (concat={concat})"

    print("KERNEL_OK")
</pallas_src>

<mosaic_0001>
module attributes {stable_mosaic.version = 11 : i64} {
  func.func @_project_kernel(%arg0: i32, %arg1: memref<128x16xf32, #tpu.memory_space<vmem>>, %arg2: memref<16x128xf32, #tpu.memory_space<vmem>>, %arg3: memref<128x128xf32, #tpu.memory_space<vmem>>, %arg4: memref<128x128xbf16, #tpu.memory_space<vmem>>, %arg5: memref<128x128xf32, #tpu.memory_space<vmem>>) attributes {dimension_semantics = [#tpu.dimension_semantics<parallel>], iteration_bounds = array<i64: 1>, scalar_prefetch = 0 : i64, scratch_operands = 0 : i64, tpu.core_type = #tpu.core_type<tc>, window_params = [{transform_indices = @transform_0, window_bounds = array<i64: 128, 16>}, {pipeline_mode = #tpu.pipeline_mode<synchronous>, transform_indices = @transform_1, window_bounds = array<i64: 16, 128>}, {pipeline_mode = #tpu.pipeline_mode<synchronous>, transform_indices = @transform_2, window_bounds = array<i64: 128, 128>}, {transform_indices = @transform_3, window_bounds = array<i64: 128, 128>}, {transform_indices = @transform_4, window_bounds = array<i64: 128, 128>}]} {
    %c0 = arith.constant 0 : index
    %c0_0 = arith.constant 0 : index
    %0 = vector.load %arg1[%c0, %c0_0] : memref<128x16xf32, #tpu.memory_space<vmem>>, vector<128x16xf32>
    %1 = arith.truncf %0 : vector<128x16xf32> to vector<128x16xbf16>
    %c0_1 = arith.constant 0 : index
    %c0_2 = arith.constant 0 : index
    %2 = vector.load %arg2[%c0_1, %c0_2] : memref<16x128xf32, #tpu.memory_space<vmem>>, vector<16x128xf32>
    %3 = arith.truncf %2 : vector<16x128xf32> to vector<16x128xbf16>
    %cst = arith.constant dense<0.000000e+00> : vector<128x128xf32>
    %4 = tpu.matmul %1, %3, %cst {dimension_numbers = #tpu.dot_dimension_numbers<[1], [0], [0], [1], [0, 0, 1, 1], [], []>} : vector<128x16xbf16>, vector<16x128xbf16>, vector<128x128xf32> -> vector<128x128xf32>
    %c0_3 = arith.constant 0 : index
    %c0_4 = arith.constant 0 : index
    %5 = vector.load %arg3[%c0_3, %c0_4] : memref<128x128xf32, #tpu.memory_space<vmem>>, vector<128x128xf32>
    %cst_5 = arith.constant dense<0.000000e+00> : vector<128x128xf32>
    %6 = tpu.matmul %4, %5, %cst_5 {dimension_numbers = #tpu.dot_dimension_numbers<[1], [0], [0], [1], [0, 0, 1, 1], [], []>} : vector<128x128xf32>, vector<128x128xf32>, vector<128x128xf32> -> vector<128x128xf32>
    %c0_6 = arith.constant 0 : index
    %c0_7 = arith.constant 0 : index
    %7 = vector.load %arg5[%c0_6, %c0_7] : memref<128x128xf32, #tpu.memory_space<vmem>>, vector<128x128xf32>
    tpu.vector_store %arg5[%c0_6, %c0_7], %6 {strides = array<i32>} : memref<128x128xf32, #tpu.memory_space<vmem>>, vector<128x128xf32>,
    %8 = arith.truncf %4 : vector<128x128xf32> to vector<128x128xbf16>
    %c0_8 = arith.constant 0 : index
    %c0_9 = arith.constant 0 : index
    %9 = vector.load %arg4[%c0_8, %c0_9] : memref<128x128xbf16, #tpu.memory_space<vmem>>, vector<128x128xbf16>
    tpu.vector_store %arg4[%c0_8, %c0_9], %8 {strides = array<i32>} : memref<128x128xbf16, #tpu.memory_space<vmem>>, vector<128x128xbf16>,
    return
  }
  func.func @transform_0(%arg0: i32) -> (i32, i32) {
    %c0_i32 = arith.constant 0 : i32
    %c0_i32_0 = arith.constant 0 : i32
    return %arg0, %c0_i32 : i32, i32
  }
  func.func @transform_1(%arg0: i32) -> (i32, i32) {
    %c0_i32 = arith.constant 0 : i32
    %c0_i32_0 = arith.constant 0 : i32
    %c0_i32_1 = arith.constant 0 : i32
    return %c0_i32, %c0_i32_0 : i32, i32
  }
  func.func @transform_2(%arg0: i32) -> (i32, i32) {
    %c0_i32 = arith.constant 0 : i32
    %c0_i32_0 = arith.constant 0 : i32
    %c0_i32_1 = arith.constant 0 : i32
    return %c0_i32, %c0_i32_0 : i32, i32
  }
  func.func @transform_3(%arg0: i32) -> (i32, i32) {
    %c0_i32 = arith.constant 0 : i32
    %c0_i32_0 = arith.constant 0 : i32
    return %arg0, %c0_i32 : i32, i32
  }
  func.func @transform_4(%arg0: i32) -> (i32, i32) {
    %c0_i32 = arith.constant 0 : i32
    %c0_i32_0 = arith.constant 0 : i32
    return %arg0, %c0_i32 : i32, i32
  }
}

</mosaic_0001>

<bundles_post_ra>
// kernel: tpu_custom_call.1
= control target key start
LH: loop header
LB: loop body
LE: loop exit
PB: predicated region body
PF: predicated region fallthrough
CT: control target
= control target key end

     0   :  { %10 = vsyncpa [#allocation3], 0  ;;  %vm46_vm0 = vcmask 130048   ;;  %s926_s0 = inlined_call_operand.vmem [shape: f32[128,16], index: 0, kind: input, shape index: {}]   ;;  %s927_s1 = inlined_call_operand.vmem [shape: f32[16,128], index: 1, kind: input, shape index: {}]   ;;  %s928_s2 = inlined_call_operand.vmem [shape: f32[128,128], index: 2, kind: input, shape index: {}]   ;;  %s929_s3 = inlined_call_operand.hbm [shape: bf16[128,128], index: 3, kind: output, shape index: {0}]   ;;  %s930_s4 = inlined_call_operand.hbm [shape: f32[128,128], index: 4, kind: output, shape index: {1}]  }
   0x1   :  { %v43_v0 = vld [vmem:[%s927_s1] sm:$0xff]  ;;  %v44_v1 = vld [vmem:[%s927_s1 + $0x8] sm:$0xff]  ;;  %v21_v5 = vld [vmem:[%s926_s0 + $0x10] sm:$0xff] }
   0x2   :  { %v19_v2 = vld [vmem:[%s926_s0] sm:$0xff]  ;;  %v45_v3 = vpack.c.bf16 %v44_v1, %v43_v0  ;;  %v20_v4 = vld [vmem:[%s926_s0 + $0x8] sm:$0xff]  ;;  %v22_v6 = vld [vmem:[%s926_s0 + $0x18] sm:$0xff] }
   0x3   :  { %v35_v7 = vpack.c.bf16 %v20_v4, %v19_v2  ;;  %v23_v8 = vld [vmem:[%s926_s0 + $0x20] sm:$0xff]  ;;  %v24_v9 = vld [vmem:[%s926_s0 + $0x28] sm:$0xff]  ;;  %v36_v10 = vpack.c.bf16 %v22_v6, %v21_v5  ;;  %v170_v14 = vld [vmem:[%s928_s2 + $0x10] sm:$0xff] }
   0x4   :  { %585 = vmatprep.subr.bf16.mxu0 %v45_v3  ;;  %v37_v11 = vpack.c.bf16 %v24_v9, %v23_v8  ;;  %v168_v12 = vld [vmem:[%s928_s2] sm:$0xff]  ;;  %v169_v13 = vld [vmem:[%s928_s2 + $0x8] sm:$0xff]  ;;  %v25_v15 = vld [vmem:[%s926_s0 + $0x30] sm:$0xff] }
   0x5   :  { %586 = vmatpush3.bf16.msra.mxu0 %v45_v3  ;;  %587 = vmatprep.mubr.msk.bf16.mxu0 %vm46_vm0, %v35_v7  ;;  %v659_v16 = vpack.c.bf16 %v169_v13, %v168_v12  ;;  %v171_v17 = vld [vmem:[%s928_s2 + $0x18] sm:$0xff]  ;;  %v172_v20 = vld [vmem:[%s928_s2 + $0x20] sm:$0xff]  ;;  %v173_v21 = vld [vmem:[%s928_s2 + $0x28] sm:$0xff] }
   0x6   :  { %v26_v18 = vld [vmem:[%s926_s0 + $0x38] sm:$0xff]  ;;  %v663_v19 = vpack.c.bf16 %v171_v17, %v170_v14  ;;  %v27_v22 = vld [vmem:[%s926_s0 + $0x40] sm:$0xff]  ;;  %v28_v23 = vld [vmem:[%s926_s0 + $0x48] sm:$0xff] }
   0x7   :  { %660 = vmatprep.subr.bf16.mxu0 %v659_v16  ;;  %691 = vmatprep.subr.bf16.mxu1 %v659_v16 }
   0x8   :  { %588 = vmatmul.mubr.msk.bf16.vlgmr.msra.gmra.mrb[0].mxu0 %vm46_vm0, %v36_v10  ;;  %699 = vmatpush3.bf16.msra.mxu1 %v659_v16 }
   0x9   :  { %591 = vmatprep.mubr.msk.bf16.mxu0 %vm46_vm0, %v37_v11  ;;  %662 = vmatpush3.bf16.msra.mxu0 %v659_v16 }
   0xa   :  { %11 = vsyncpa [#allocation5], 0  ;;  %v38_v24 = vpack.c.bf16 %v26_v18, %v25_v15  ;;  %664 = vmatprep.subr.bf16.mxu0 %v663_v19  ;;  %v667_v25 = vpack.c.bf16 %v173_v21, %v172_v20  ;;  %692 = vmatprep.subr.bf16.mxu1 %v663_v19  ;;  %v39_v26 = vpack.c.bf16 %v28_v23, %v27_v22  ;;  %v174_v27 = vld [vmem:[%s928_s2 + $0x30] sm:$0xff]  ;;  %v175_v28 = vld [vmem:[%s928_s2 + $0x38] sm:$0xff] }
   0xb   :  { %v29_v29 = vld [vmem:[%s926_s0 + $0x50] sm:$0xff]  ;;  %v671_v30 = vpack.c.bf16 %v175_v28, %v174_v27  ;;  %v30_v31 = vld [vmem:[%s926_s0 + $0x58] sm:$0xff]  ;;  %v176_v32 = vld [vmem:[%s928_s2 + $0x40] sm:$0xff] }
   0xc   :  { %700 = vmatpush3.bf16.msra.mxu1 %v663_v19  ;;  %v177_v33 = vld [vmem:[%s928_s2 + $0x48] sm:$0xff]  ;;  %v31_v34 = vld [vmem:[%s926_s0 + $0x60] sm:$0xff]  ;;  %v40_v36 = vpack.c.bf16 %v30_v31, %v29_v29  ;;  %v178_v39 = vld [vmem:[%s928_s2 + $0x50] sm:$0xff] }
   0xd   :  { %666 = vmatpush3.bf16.msra.mxu0 %v663_v19  ;;  %693 = vmatprep.subr.bf16.mxu1 %v667_v25  ;;  %v32_v35 = vld [vmem:[%s926_s0 + $0x68] sm:$0xff]  ;;  %v675_v37 = vpack.c.bf16 %v177_v33, %v176_v32  ;;  %v179_v40 = vld [vmem:[%s928_s2 + $0x58] sm:$0xff]  ;;  %v33_v41 = vld [vmem:[%s926_s0 + $0x70] sm:$0xff] }
   0xe   :  { %668 = vmatprep.subr.bf16.mxu0 %v667_v25  ;;  %v41_v38 = vpack.c.bf16 %v32_v35, %v31_v34  ;;  %v679_v42 = vpack.c.bf16 %v179_v40, %v178_v39  ;;  %v34_v43 = vld [vmem:[%s926_s0 + $0x78] sm:$0xff]  ;;  %v180_v44 = vld [vmem:[%s928_s2 + $0x60] sm:$0xff]  ;;  %v181_v45 = vld [vmem:[%s928_s2 + $0x68] sm:$0xff] }
   0xf   :  { %v42_v46 = vpack.c.bf16 %v34_v43, %v33_v41  ;;  %v683_v47 = vpack.c.bf16 %v181_v45, %v180_v44  ;;  %v182_v48 = vld [vmem:[%s928_s2 + $0x70] sm:$0xff]  ;;  %v183_v49 = vld [vmem:[%s928_s2 + $0x78] sm:$0xff]  ;;  %s761_s2 = smov [#allocation2]  }
  0x10   :  { %592 = vmatmul.mubr.msk.bf16.gmra.mrb[4].mxu0 %vm46_vm0, %v38_v24  ;;  %701 = vmatpush3.bf16.msra.mxu1 %v667_v25  ;;  %v687_v50 = vpack.c.bf16 %v183_v49, %v182_v48  ;;  %s430_s27 = sshll.u32 %s761_s2, 4  ;;  %s431_s27 = int_to_ptr.vmem [resolvable:$true] %s430_s27 }
  0x11   :  { %595 = vmatprep.mubr.msk.bf16.mxu0 %vm46_vm0, %v39_v26  ;;  %670 = vmatpush3.bf16.msra.mxu0 %v667_v25  ;;  %s713_s28 = scalar_lea.vmem %s431_s27, 1024  ;;  %p718_p1 = scmp.lt.s32.totalorder %s431_s27, %s431_s27 }
  0x12   :  { %672 = vmatprep.subr.bf16.mxu0 %v671_v30  ;;  %694 = vmatprep.subr.bf16.mxu1 %v671_v30  ;;  %p714_p0 = scmp.ne.s32.totalorder %s431_s27, %s713_s28  ;;  %p719_p2 = scmp.lt.s32.totalorder %s713_s28, %s713_s28 }
  0x14   :  { %702 = vmatpush3.bf16.msra.mxu1 %v671_v30  ;;  %p720_p3 = por %p719_p2, %p718_p1 }
  0x15   :  { %674 = vmatpush3.bf16.msra.mxu0 %v671_v30  ;;  %695 = vmatprep.subr.bf16.mxu1 %v675_v37 }
  0x16   :  { %676 = vmatprep.subr.bf16.mxu0 %v675_v37  ;;  %p721_p4 = pnand %p720_p3, %p714_p0 }
  0x18   :  { %596 = vmatmul.mubr.msk.bf16.gmra.mrb[8].mxu0 %vm46_vm0, %v40_v36  ;;  %703 = vmatpush3.bf16.msra.mxu1 %v675_v37 }
  0x19   :  { %599 = vmatprep.mubr.msk.bf16.mxu0 %vm46_vm0, %v41_v38  ;;  %678 = vmatpush3.bf16.msra.mxu0 %v675_v37 }
  0x1a   :  { %680 = vmatprep.subr.bf16.mxu0 %v679_v42  ;;  %696 = vmatprep.subr.bf16.mxu1 %v679_v42 }
  0x1c   :  { %704 = vmatpush3.bf16.msra.mxu1 %v679_v42 }
  0x1d   :  { %682 = vmatpush3.bf16.msra.mxu0 %v679_v42  ;;  %697 = vmatprep.subr.bf16.mxu1 %v683_v47 }
  0x1e   :  { %684 = vmatprep.subr.bf16.mxu0 %v683_v47 }
  0x20   :  { %600 = vmatmul.mubr.msk.bf16.gmra.mrb[12].mxu0 %vm46_vm0, %v42_v46  ;;  %705 = vmatpush3.bf16.msra.mxu1 %v683_v47 }
  0x21   :  { %686 = vmatpush3.bf16.msra.mxu0 %v683_v47  ;;  %698 = vmatprep.subr.bf16.mxu1 %v687_v50 }
  0x22   :  { %688 = vmatprep.subr.bf16.mxu0 %v687_v50 }
  0x24   :  { %706 = vmatpush3.bf16.msra.mxu1 %v687_v50 }
  0x25   :  { %690 = vmatpush3.bf16.msra.mxu0 %v687_v50 }
  0xdb   :  { %v589_v51 = vpop.f32.mrb[0].mxu0 }
  0xdc   :  { %v105_v52 = vpop.f32.mrb[1].mxu0 }
  0xdd   :  { %v590_v53 = vpop.f32.mrb[2].mxu0  ;;  %635 = vmatprep.mubr.f32.mxu0 %v105_v52 }
  0xde   :  { %v505_v54 = vpack.c.bf16 %v590_v53, %v589_v51  ;;  %v108_v55 = vpop.f32.mrb[3].mxu0 }
  0xdf   :  { %v500_v56 = vpack.c.bf16 %v108_v55, %v105_v52  ;;  %636 = vmatmul.mubr.f32.vlgmr.msra.gmra.mrb[16].mxu0 %v108_v55 }
  0xe0   :  { %537 = vst [vmem:[#allocation2 + $0x8] sm:$0xff] %v505_v54   ;;  %638 = vmatprep.mubr.f32.mxu0 %v589_v51 }
  0xe1   :  { %501 = vst [vmem:[#allocation2] sm:$0xff] %v500_v56  }
  0xe3   :  { %v593_v57 = vpop.f32.mrb[4].mxu0  ;;  %639 = vmatmul.mubr.f32.gmra.mrb[18].mxu0 %v590_v53 }
  0xe4   :  { %v121_v58 = vpop.f32.mrb[5].mxu0  ;;  %644 = vmatprep.mubr.f32.mxu1 %v593_v57 }
  0xe5   :  { %v594_v59 = vpop.f32.mrb[6].mxu0  ;;  %641 = vmatprep.mubr.f32.mxu0 %v121_v58 }
  0xe6   :  { %v515_v60 = vpack.c.bf16 %v594_v59, %v593_v57  ;;  %v124_v61 = vpop.f32.mrb[7].mxu0  ;;  %645 = vmatmul.mubr.f32.vlgmr.msra.gmra.mrb[0].mxu1 %v594_v59 }
  0xe7   :  { %v510_v62 = vpack.c.bf16 %v124_v61, %v121_v58  ;;  %642 = vmatmul.mubr.f32.gmra.mrb[20].mxu0 %v124_v61 }
  0xe8   :  { %539 = vst [vmem:[#allocation2 + $0x18] sm:$0xff] %v515_v60  }
  0xe9   :  { %538 = vst [vmem:[#allocation2 + $0x10] sm:$0xff] %v510_v62  }
  0xeb   :  { %v597_v63 = vpop.f32.mrb[8].mxu0 }
  0xec   :  { %v137_v0 = vpop.f32.mrb[9].mxu0 }
  0xed   :  { %v598_v1 = vpop.f32.mrb[10].mxu0  ;;  %647 = vmatprep.mubr.f32.mxu1 %v137_v0 }
  0xee   :  { %v525_v2 = vpack.c.bf16 %v598_v1, %v597_v63  ;;  %v140_v3 = vpop.f32.mrb[11].mxu0 }
  0xef   :  { %v520_v4 = vpack.c.bf16 %v140_v3, %v137_v0  ;;  %648 = vmatmul.mubr.f32.gmra.mrb[2].mxu1 %v140_v3 }
  0xf0   :  { %541 = vst [vmem:[#allocation2 + $0x28] sm:$0xff] %v525_v2   ;;  %650 = vmatprep.mubr.f32.mxu1 %v597_v63 }
  0xf1   :  { %540 = vst [vmem:[#allocation2 + $0x20] sm:$0xff] %v520_v4  }
  0xf3   :  { %v601_v5 = vpop.f32.mrb[12].mxu0  ;;  %651 = vmatmul.mubr.f32.gmra.mrb[4].mxu1 %v598_v1 }
  0xf4   :  { %v153_v6 = vpop.f32.mrb[13].mxu0 }
  0xf5   :  { %v602_v7 = vpop.f32.mrb[14].mxu0  ;;  %653 = vmatprep.mubr.f32.mxu1 %v153_v6 }
  0xf6   :  { %v535_v8 = vpack.c.bf16 %v602_v7, %v601_v5  ;;  %v156_v9 = vpop.f32.mrb[15].mxu0 }
  0xf7   :  { %v530_v10 = vpack.c.bf16 %v156_v9, %v153_v6  ;;  %654 = vmatmul.mubr.f32.gmra.mrb[6].mxu1 %v156_v9 }
  0xf8   :  { %543 = vst [vmem:[#allocation2 + $0x38] sm:$0xff] %v535_v8   ;;  %656 = vmatprep.mubr.f32.mxu1 %v601_v5 }
  0xf9   :  { %542 = vst [vmem:[#allocation2 + $0x30] sm:$0xff] %v530_v10  }
  0xfb   :  { %657 = vmatmul.mubr.f32.gmra.mrb[8].mxu1 %v602_v7 }
  0xfc   :  { %724 = shalt.err (!%p721_p4)
}
  0xfd   :  { %s725_s5 = scalar_lea.hbm %s929_s3, 1024 }
  0xfe   :  { %p726_p5 = scmp.ne.s32.totalorder %s929_s3, %s725_s5  ;;  %p729_p6 = scmp.lt.u32.totalorder %s725_s5, %s929_s3 }
 0x100   :  { %p731_p7 = pnand %p729_p6, %p726_p5 }
 0x102   :  { %734 = shalt.err (!%p731_p7)
}
 0x103   :  { %s762_s10 = smov 64   ;;  %s763_s11 = smov 4  }
 0x104   :  { %436 = dma.vmem_to_hbm [thread:$0]  %s431_s27, 1024, %s929_s3, [#allocation3], %s762_s10, %s762_s10, %s763_s11  }
 0x105   :  { %s764_s3 = smov [#allocation4]  }
 0x106   :  { %s442_s14 = sshll.u32 %s764_s3, 4  ;;  %s443_s14 = int_to_ptr.vmem [resolvable:$true] %s442_s14 }
 0x107   :  { %s735_s15 = scalar_lea.vmem %s443_s14, 2048  ;;  %p740_p9 = scmp.lt.s32.totalorder %s443_s14, %s443_s14 }
 0x108   :  { %p736_p8 = scmp.ne.s32.totalorder %s443_s14, %s735_s15  ;;  %p741_p10 = scmp.lt.s32.totalorder %s735_s15, %s735_s15 }
 0x10a   :  { %p742_p11 = por %p741_p10, %p740_p9 }
 0x10c   :  { %p743_p12 = pnand %p742_p11, %p736_p8 }
 0x1b2   :  { %v637_v11 = vpop.f32.mrb[16].mxu0 }
 0x1b3   :  { %330 = vst [vmem:[#allocation4 + $0x8] sm:$0xff] %v637_v11  ;;  %v250_v12 = vpop.f32.mrb[17].mxu0 }
 0x1b4   :  { %329 = vst [vmem:[#allocation4] sm:$0xff] %v250_v12 }
 0x1b6   :  { %v640_v13 = vpop.f32.mrb[18].mxu0 }
 0x1b7   :  { %332 = vst [vmem:[#allocation4 + $0x18] sm:$0xff] %v640_v13  ;;  %v260_v14 = vpop.f32.mrb[19].mxu0 }
 0x1b8   :  { %331 = vst [vmem:[#allocation4 + $0x10] sm:$0xff] %v260_v14 }
 0x1b9   :  { %v646_v15 = vpop.f32.mrb[0].mxu1 }
 0x1ba   :  { %336 = vst [vmem:[#allocation4 + $0x38] sm:$0xff] %v646_v15  ;;  %v643_v16 = vpop.f32.mrb[20].mxu0  ;;  %v280_v17 = vpop.f32.mrb[1].mxu1 }
 0x1bb   :  { %334 = vst [vmem:[#allocation4 + $0x28] sm:$0xff] %v643_v16  ;;  %335 = vst [vmem:[#allocation4 + $0x30] sm:$0xff] %v280_v17  ;;  %v270_v18 = vpop.f32.mrb[21].mxu0 }
 0x1bc   :  { %333 = vst [vmem:[#allocation4 + $0x20] sm:$0xff] %v270_v18 }
 0x1c2   :  { %v649_v19 = vpop.f32.mrb[2].mxu1 }
 0x1c3   :  { %338 = vst [vmem:[#allocation4 + $0x48] sm:$0xff] %v649_v19  ;;  %v290_v20 = vpop.f32.mrb[3].mxu1 }
 0x1c4   :  { %337 = vst [vmem:[#allocation4 + $0x40] sm:$0xff] %v290_v20 }
 0x1c6   :  { %v652_v21 = vpop.f32.mrb[4].mxu1 }
 0x1c7   :  { %340 = vst [vmem:[#allocation4 + $0x58] sm:$0xff] %v652_v21  ;;  %v300_v22 = vpop.f32.mrb[5].mxu1 }
 0x1c8   :  { %339 = vst [vmem:[#allocation4 + $0x50] sm:$0xff] %v300_v22 }
 0x1ca   :  { %v655_v23 = vpop.f32.mrb[6].mxu1 }
 0x1cb   :  { %342 = vst [vmem:[#allocation4 + $0x68] sm:$0xff] %v655_v23  ;;  %v310_v24 = vpop.f32.mrb[7].mxu1 }
 0x1cc   :  { %341 = vst [vmem:[#allocation4 + $0x60] sm:$0xff] %v310_v24 }
 0x1ce   :  { %v658_v25 = vpop.f32.mrb[8].mxu1 }
 0x1cf   :  { %344 = vst [vmem:[#allocation4 + $0x78] sm:$0xff] %v658_v25  ;;  %v320_v26 = vpop.f32.mrb[9].mxu1 }
 0x1d0   :  { %343 = vst [vmem:[#allocation4 + $0x70] sm:$0xff] %v320_v26 }
 0x1d1   :  { %746 = shalt.err (!%p743_p12)
}
 0x1d2   :  { %s747_s18 = scalar_lea.hbm %s930_s4, 2048 }
 0x1d3   :  { %p748_p13 = scmp.ne.s32.totalorder %s930_s4, %s747_s18  ;;  %p751_p0 = scmp.lt.u32.totalorder %s747_s18, %s930_s4 }
 0x1d5   :  { %p753_p1 = pnand %p751_p0, %p748_p13 }
 0x1d7   :  { %756 = shalt.err (!%p753_p1)
}
 0x1d8   :  { %s765_s23 = smov 128   ;;  %s766_s24 = smov 8  }
 0x1d9   :  { %448 = dma.vmem_to_hbm [thread:$0]  %s443_s14, 2048, %s930_s4, [#allocation5], %s765_s23, %s765_s23, %s766_s24  }
 0x1da   :  { %757 = dma.done.wait [#allocation3], 1024  }
 0x1db   :  { %758 = vsyncadd [#allocation3], 4294966272 }
 0x1dc   :  { %759 = dma.done.wait [#allocation5], 2048  }
 0x1dd   :  { %760 = vsyncadd [#allocation5], 4294965248 }
 0x1de   :  { %455 = vsyncpa [#allocation3], 1 }
 0x1df   :  { %456 = vsyncpa [#allocation5], 1 }

</bundles_post_ra>
